<compile_context>
chip_gen: v7x
topology: tpu7x:2x2x1
jax: 0.10.0
libtpu: 0.0.40
codegen_flags: <defaults>
</compile_context>

<pallas_src>
import math

import numpy as np

import jax
import jax.numpy as jnp
from jax.experimental import pallas as pl
from jax.experimental.pallas import tpu as pltpu


# -----------------------------------------------------------------------------
# Pallas kernel: one row tile of   y = (x @ W^T + bias) * row_valid
# -----------------------------------------------------------------------------
def _embed_kernel(x_ref, w_ref, b_ref, m_ref, o_ref):
    # x_ref : VMEM (tile_m, F_pad)  flattened, zero-padded features
    # w_ref : VMEM (F_pad, D_pad)   Linear weight, transposed + zero-padded
    # b_ref : VMEM (1, D_pad)       Linear bias, zero-padded
    # m_ref : VMEM (tile_m, 1)      1.0 for valid rows, 0.0 for masked/pad rows
    # o_ref : VMEM (tile_m, D_pad)  lane-dense output tile
    y = jnp.dot(x_ref[...], w_ref[...], preferred_element_type=jnp.float32)
    y = (y + b_ref[...]) * m_ref[...]       # bias broadcast + row-length mask
    o_ref[...] = y.astype(o_ref.dtype)


def _round_up(x, m):
    return ((x + m - 1) // m) * m


def _pick_tile_m(M, F_pad, D_pad, vmem_budget_bytes=16 * 1024 * 1024):
    """Largest power-of-two row tile (<=1024, multiple of 8) whose
    double-buffered x/out tiles + resident W/bias fit a conservative budget."""
    tile = 1024
    while tile > 8:
        need = 4 * (2 * tile * (F_pad + D_pad + 1) + F_pad * D_pad + D_pad)
        if need <= vmem_budget_bytes:
            break
        tile //= 2
    tile = max(8, tile)
    return min(tile, _round_up(M, 8))


def graph_embed_pallas(x_pad, w_t_pad, bias_pad, mask_pad, tile_m):
    """x_pad: (M_pad, F_pad) f32; w_t_pad: (F_pad, D_pad) f32;
    bias_pad: (1, D_pad) f32; mask_pad: (M_pad, 1) f32.
    Returns (M_pad, D_pad) f32."""
    M_pad, F_pad = x_pad.shape
    D_pad = w_t_pad.shape[1]
    grid = (M_pad // tile_m,)

    cost = pl.CostEstimate(
        flops=2 * M_pad * F_pad * D_pad,
        transcendentals=0,
        bytes_accessed=4 * (M_pad * F_pad + F_pad * D_pad + M_pad * D_pad
                            + M_pad + D_pad),
    )

    return pl.pallas_call(
        _embed_kernel,
        out_shape=jax.ShapeDtypeStruct((M_pad, D_pad), jnp.float32),
        grid_spec=pltpu.PrefetchScalarGridSpec(
            num_scalar_prefetch=0,
            grid=grid,
            in_specs=[
                pl.BlockSpec((tile_m, F_pad), lambda i: (i, 0)),  # x row tile
                pl.BlockSpec((F_pad, D_pad), lambda i: (0, 0)),   # W^T (resident)
                pl.BlockSpec((1, D_pad), lambda i: (0, 0)),       # bias (resident)
                pl.BlockSpec((tile_m, 1), lambda i: (i, 0)),      # row validity
            ],
            out_specs=pl.BlockSpec((tile_m, D_pad), lambda i: (i, 0)),
        ),
        compiler_params=pltpu.CompilerParams(
            dimension_semantics=("parallel",),  # no cross-step accumulation
        ),
        cost_estimate=cost,
    )(x_pad, w_t_pad, bias_pad, mask_pad)


# -----------------------------------------------------------------------------
# Host-side glue: build features exactly like GraphEmbedder.forward
# (grammar=None, embed_self=True) from simple synthetic graphs.
# -----------------------------------------------------------------------------
def build_features(graphs, max_nodes, embed_self=True):
    """graphs: list of (num_nodes, [(i, j, wgt), ...]) or None.
    Returns (features (B, this_max_nodes, 2*max_nodes) np.f32,
             lengths (B,) np.i32, all_none flag)."""
    batch_size = len(graphs)
    feat_dim = 2 * max_nodes  # grammar is None -> no node-data block
    if all(g is None for g in graphs):
        return None, None, True

    this_max_nodes = max(1 if g is None else g[0] for g in graphs)
    out = np.zeros((batch_size, this_max_nodes, feat_dim), dtype=np.float32)
    lengths = np.zeros((batch_size,), dtype=np.int32)

    for i, g in enumerate(graphs):
        if g is None:
            out[i, 0, :] = 0.1
            # PyTorch does not zero rows of None graphs -> keep all rows valid.
            lengths[i] = this_max_nodes
            continue
        n_nodes, edges = g
        lengths[i] = n_nodes
        for (idx1, idx2, wgt) in edges:
            if idx1 < this_max_nodes and idx2 < this_max_nodes:
                out[i, idx1, idx2] = wgt
                out[i, idx2, idx1] = wgt
        for n in range(min(n_nodes, max_nodes)):
            if embed_self:
                out[i, n, max_nodes + n] = 1.0
        # TODO(synk): grammar node-data one-hot block not implemented
        # (grammar=None in this synthetic setup).

    return out, lengths, False


def graph_embedder_forward(graphs, max_nodes, weight, bias):
    """Mirrors GraphEmbedder.forward semantics (grammar=None)."""
    target_dim = weight.shape[0]
    features, lengths, all_none = build_features(graphs, max_nodes)
    if all_none:
        return 0.1 * jnp.ones((len(graphs), 1, target_dim), dtype=jnp.float32)

    B, N, F = features.shape
    D = target_dim
    M = B * N

    # Lane-dense padding: F, D up to multiples of 128; rows up to a multiple of
    # the row tile (multiple of 8, VMEM-budget capped).
    F_pad = _round_up(F, 128)
    D_pad = _round_up(D, 128)
    tile_m = _pick_tile_m(M, F_pad, D_pad)
    M_pad = _round_up(M, tile_m)

    x_pad = np.zeros((M_pad, F_pad), dtype=np.float32)
    x_pad[:M, :F] = features.reshape(M, F)

    valid = (np.arange(N)[None, :] < lengths[:, None]).astype(np.float32)  # (B, N)
    mask_pad = np.zeros((M_pad, 1), dtype=np.float32)
    mask_pad[:M, 0] = valid.reshape(M)

    w_t_pad = jnp.zeros((F_pad, D_pad), dtype=jnp.float32).at[:F, :D].set(weight.T)
    bias_pad = jnp.zeros((1, D_pad), dtype=jnp.float32).at[0, :D].set(bias)

    out_pad = graph_embed_pallas(
        jnp.asarray(x_pad), w_t_pad, bias_pad, jnp.asarray(mask_pad), tile_m)
    return out_pad[:M, :D].reshape(B, N, D)


# -----------------------------------------------------------------------------
# Main: deterministic params, small synthetic graphs, reference check.
# -----------------------------------------------------------------------------
if __name__ == "__main__":
    MAX_NODES = 8          # module's max_nodes (kept small)
    TARGET_DIM = 32        # module's target_dim
    FEAT_DIM = 2 * MAX_NODES

    key = jax.random.PRNGKey(0)
    kw, kb = jax.random.split(key)
    # torch.nn.Linear default init: U(-1/sqrt(in), 1/sqrt(in))
    bound = 1.0 / math.sqrt(FEAT_DIM)
    weight = jax.random.uniform(kw, (TARGET_DIM, FEAT_DIM),
                                minval=-bound, maxval=bound,
                                dtype=jnp.float32)
    bias = jax.random.uniform(kb, (TARGET_DIM,),
                              minval=-bound, maxval=bound,
                              dtype=jnp.float32)

    # Two small synthetic graphs: (num_nodes, [(i, j, weight), ...])
    graphs = [
        (5, [(0, 1, 1.0), (1, 2, 2.0), (2, 3, 1.0), (3, 4, 1.0), (0, 4, 1.0)]),
        (8, [(0, 1, 1.0), (1, 2, 1.0), (2, 3, 3.0), (4, 5, 1.0),
             (5, 6, 1.0), (6, 7, 2.0), (0, 7, 1.0)]),
    ]

    out = graph_embedder_forward(graphs, MAX_NODES, weight, bias)
    out = jax.block_until_ready(out)

    # Pure-JAX reference for correctness check (on the unpadded features).
    features, lengths, _ = build_features(graphs, MAX_NODES)
    feats_j = jnp.asarray(features)
    ref = jnp.einsum("bnf,df->bnd", feats_j, weight) + bias[None, None, :]
    row_ids = jnp.arange(features.shape[1])[None, :, None]
    ref = jnp.where(row_ids < jnp.asarray(lengths)[:, None, None], ref, 0.0)

    assert out.shape == (len(graphs), features.shape[1], TARGET_DIM), out.shape
    np.testing.assert_allclose(np.asarray(out), np.asarray(ref),
                               rtol=1e-5, atol=1e-5)
    print("KERNEL_OK")
</pallas_src>

<mosaic_0001>
module attributes {stable_mosaic.version = 11 : i64} {
  func.func @_embed_kernel(%arg0: i32, %arg1: memref<16x128xf32, #tpu.memory_space<vmem>>, %arg2: memref<128x128xf32, #tpu.memory_space<vmem>>, %arg3: memref<1x128xf32, #tpu.memory_space<vmem>>, %arg4: memref<16x1xf32, #tpu.memory_space<vmem>>, %arg5: memref<16x128xf32, #tpu.memory_space<vmem>>) attributes {dimension_semantics = [#tpu.dimension_semantics<parallel>], iteration_bounds = array<i64: 1>, scalar_prefetch = 0 : i64, scratch_operands = 0 : i64, tpu.core_type = #tpu.core_type<tc>, window_params = [{transform_indices = @transform_0, window_bounds = array<i64: 16, 128>}, {pipeline_mode = #tpu.pipeline_mode<synchronous>, transform_indices = @transform_1, window_bounds = array<i64: 128, 128>}, {pipeline_mode = #tpu.pipeline_mode<synchronous>, transform_indices = @transform_2, window_bounds = array<i64: 1, 128>}, {transform_indices = @transform_3, window_bounds = array<i64: 16, 1>}, {transform_indices = @transform_4, window_bounds = array<i64: 16, 128>}]} {
    %c0 = arith.constant 0 : index
    %c0_0 = arith.constant 0 : index
    %0 = vector.load %arg1[%c0, %c0_0] : memref<16x128xf32, #tpu.memory_space<vmem>>, vector<16x128xf32>
    %c0_1 = arith.constant 0 : index
    %c0_2 = arith.constant 0 : index
    %1 = vector.load %arg2[%c0_1, %c0_2] : memref<128x128xf32, #tpu.memory_space<vmem>>, vector<128x128xf32>
    %cst = arith.constant dense<0.000000e+00> : vector<16x128xf32>
    %2 = tpu.matmul %0, %1, %cst {dimension_numbers = #tpu.dot_dimension_numbers<[1], [0], [0], [1], [0, 0, 1, 1], [], []>} : vector<16x128xf32>, vector<128x128xf32>, vector<16x128xf32> -> vector<16x128xf32>
    %c0_3 = arith.constant 0 : index
    %c0_4 = arith.constant 0 : index
    %3 = vector.load %arg3[%c0_3, %c0_4] : memref<1x128xf32, #tpu.memory_space<vmem>>, vector<1x128xf32>
    %4 = vector.broadcast %3 : vector<1x128xf32> to vector<16x128xf32>
    %5 = arith.addf %2, %4 : vector<16x128xf32>
    %c0_5 = arith.constant 0 : index
    %c0_6 = arith.constant 0 : index
    %6 = vector.load %arg4[%c0_5, %c0_6] : memref<16x1xf32, #tpu.memory_space<vmem>>, vector<16x1xf32>
    %7 = vector.broadcast %6 : vector<16x1xf32> to vector<16x128xf32>
    %8 = arith.mulf %5, %7 : vector<16x128xf32>
    %c0_7 = arith.constant 0 : index
    %c0_8 = arith.constant 0 : index
    %9 = vector.load %arg5[%c0_7, %c0_8] : memref<16x128xf32, #tpu.memory_space<vmem>>, vector<16x128xf32>
    tpu.vector_store %arg5[%c0_7, %c0_8], %8 {strides = array<i32>} : memref<16x128xf32, #tpu.memory_space<vmem>>, vector<16x128xf32>,
    return
  }
  func.func @transform_0(%arg0: i32) -> (i32, i32) {
    %c0_i32 = arith.constant 0 : i32
    %c0_i32_0 = arith.constant 0 : i32
    return %arg0, %c0_i32 : i32, i32
  }
  func.func @transform_1(%arg0: i32) -> (i32, i32) {
    %c0_i32 = arith.constant 0 : i32
    %c0_i32_0 = arith.constant 0 : i32
    %c0_i32_1 = arith.constant 0 : i32
    return %c0_i32, %c0_i32_0 : i32, i32
  }
  func.func @transform_2(%arg0: i32) -> (i32, i32) {
    %c0_i32 = arith.constant 0 : i32
    %c0_i32_0 = arith.constant 0 : i32
    %c0_i32_1 = arith.constant 0 : i32
    return %c0_i32, %c0_i32_0 : i32, i32
  }
  func.func @transform_3(%arg0: i32) -> (i32, i32) {
    %c0_i32 = arith.constant 0 : i32
    %c0_i32_0 = arith.constant 0 : i32
    return %arg0, %c0_i32 : i32, i32
  }
  func.func @transform_4(%arg0: i32) -> (i32, i32) {
    %c0_i32 = arith.constant 0 : i32
    %c0_i32_0 = arith.constant 0 : i32
    return %arg0, %c0_i32 : i32, i32
  }
}

</mosaic_0001>

<bundles_post_ra>
// kernel: tpu_custom_call.1
= control target key start
LH: loop header
LB: loop body
LE: loop exit
PB: predicated region body
PF: predicated region fallthrough
CT: control target
= control target key end

     0   :  { %9 = vsyncpa [#allocation3], 0  ;;  %s380_s0 = inlined_call_operand.vmem [shape: f32[16,128], index: 0, kind: input, shape index: {}]   ;;  %s381_s1 = inlined_call_operand.hbm [shape: f32[128,128], index: 1, kind: input, shape index: {}]   ;;  %s382_s2 = inlined_call_operand.vmem [shape: f32[1,128], index: 2, kind: input, shape index: {}]   ;;  %s383_s3 = inlined_call_operand.vmem [shape: f32[16,1], index: 3, kind: input, shape index: {}]   ;;  %s384_s4 = inlined_call_operand.hbm [shape: f32[16,128], index: 4, kind: output, shape index: {}]  }
   0x1   :  { %10 = vsyncpa [#allocation4], 0  ;;  %s305_s15 = smov [#allocation2]   ;;  %s257_s19 = scalar_lea.hbm %s381_s1, 2048 }
   0x2   :  { %s18_s16 = sshll.u32 %s305_s15, 4  ;;  %p258_p0 = scmp.ne.s32.totalorder %s381_s1, %s257_s19  ;;  %s19_s16 = int_to_ptr.vmem [resolvable:$true] %s18_s16 }
   0x3   :  { %p261_p1 = scmp.lt.u32.totalorder %s257_s19, %s381_s1 }
   0x5   :  { %p263_p2 = pnand %p261_p1, %p258_p0 }
   0x7   :  { %266 = shalt.err (!%p263_p2)
}
   0x8   :  { %s267_s24 = scalar_lea.vmem %s19_s16, 2048  ;;  %p272_p4 = scmp.lt.s32.totalorder %s19_s16, %s19_s16 }
   0x9   :  { %p268_p3 = scmp.ne.s32.totalorder %s19_s16, %s267_s24  ;;  %p273_p5 = scmp.lt.s32.totalorder %s267_s24, %s267_s24 }
   0xb   :  { %p274_p6 = por %p273_p5, %p272_p4 }
   0xd   :  { %p275_p7 = pnand %p274_p6, %p268_p3 }
   0xf   :  { %278 = shalt.err (!%p275_p7)
}
  0x10   :  { %s306_s25 = smov 128   ;;  %s307_s26 = smov 8  }
  0x11   :  { %24 = dma.hbm_to_vmem [thread:$0]  %s381_s1, 2048, %s19_s16, [#allocation3], %s306_s25, %s306_s25, %s307_s26  }
  0x12   :  { %301 = dma.done.wait [#allocation3], 2048  }
  0x13   :  { %302 = vsyncadd [#allocation3], 4294965248  ;;  %v308_v0 = vmov 0   ;;  %v34_v1 = vld [vmem:[#allocation2] sm:$0xff]  ;;  %v35_v2 = vld [vmem:[#allocation2 + $0x8] sm:$0xff]  ;;  %s309_s11 = smov [#allocation5]  }
  0x14   :  { %256 = vset.pattern.permute.xlu0 %v308_v0  ;;  %v36_v3 = vld [vmem:[#allocation2 + $0x10] sm:$0xff]  ;;  %v219_v4 = vpack.c.bf16 %v35_v2, %v34_v1  ;;  %v37_v5 = vld [vmem:[#allocation2 + $0x18] sm:$0xff]  ;;  %v38_v7 = vld [vmem:[#allocation2 + $0x20] sm:$0xff]  ;;  %s153_s12 = sshll.u32 %s309_s11, 4  ;;  %s154_s12 = int_to_ptr.vmem [resolvable:$true] %s153_s12 }
  0x15   :  { %v223_v6 = vpack.c.bf16 %v37_v5, %v36_v3  ;;  %v39_v8 = vld [vmem:[#allocation2 + $0x28] sm:$0xff]  ;;  %v32_v10 = vld [vmem:[%s380_s0] sm:$0xff]  ;;  %v40_v11 = vld [vmem:[#allocation2 + $0x30] sm:$0xff]  ;;  %s279_s13 = scalar_lea.vmem %s154_s12, 256  ;;  %p284_p9 = scmp.lt.s32.totalorder %s154_s12, %s154_s12 }
  0x16   :  { %220 = vmatprep.subr.bf16.mxu0 %v219_v4  ;;  %v227_v9 = vpack.c.bf16 %v39_v8, %v38_v7  ;;  %v41_v12 = vld [vmem:[#allocation2 + $0x38] sm:$0xff]  ;;  %216 = vmatprep.mubr.f32.mxu0 %v32_v10  ;;  %v132_v13 = vld [vmem:[%s383_s3] sm:$0xff]  ;;  %v133_v14 = vld [vmem:[%s383_s3 + $0x8] sm:$0xff]  ;;  %p280_p8 = scmp.ne.s32.totalorder %s154_s12, %s279_s13  ;;  %p285_p10 = scmp.lt.s32.totalorder %s279_s13, %s279_s13 }
  0x17   :  { %222 = vmatpush3.bf16.msra.mxu0 %v219_v4  ;;  %136 = vperm.xlu0 %256, %v132_v13   ;;  %v231_v15 = vpack.c.bf16 %v41_v12, %v40_v11  ;;  %v42_v16 = vld [vmem:[#allocation2 + $0x40] sm:$0xff]  ;;  %v43_v17 = vld [vmem:[#allocation2 + $0x48] sm:$0xff]  ;;  %v44_v19 = vld [vmem:[#allocation2 + $0x50] sm:$0xff] }
  0x18   :  { %224 = vmatprep.subr.bf16.mxu0 %v223_v6  ;;  %v235_v18 = vpack.c.bf16 %v43_v17, %v42_v16  ;;  %v45_v20 = vld [vmem:[#allocation2 + $0x58] sm:$0xff]  ;;  %v46_v22 = vld [vmem:[#allocation2 + $0x60] sm:$0xff]  ;;  %v47_v23 = vld [vmem:[#allocation2 + $0x68] sm:$0xff]  ;;  %p286_p11 = por %p285_p10, %p284_p9 }
  0x19   :  { %v239_v21 = vpack.c.bf16 %v45_v20, %v44_v19  ;;  %v243_v24 = vpack.c.bf16 %v47_v23, %v46_v22  ;;  %v48_v25 = vld [vmem:[#allocation2 + $0x70] sm:$0xff]  ;;  %v49_v26 = vld [vmem:[#allocation2 + $0x78] sm:$0xff]  ;;  %v33_v28 = vld [vmem:[%s380_s0 + $0x8] sm:$0xff] }
  0x1a   :  { %v247_v27 = vpack.c.bf16 %v49_v26, %v48_v25  ;;  %v165_v30 = vld [vmem:[%s382_s2] ss:$0 sm:$0xff]  ;;  %p287_p12 = pnand %p286_p11, %p280_p8 }
  0x1b   :  { %226 = vmatpush3.bf16.msra.mxu0 %v223_v6  ;;  %141 = vperm.xlu0 %256, %v133_v14  }
  0x1c   :  { %228 = vmatprep.subr.bf16.mxu0 %v227_v9 }
  0x1f   :  { %230 = vmatpush3.bf16.msra.mxu0 %v227_v9 }
  0x20   :  { %232 = vmatprep.subr.bf16.mxu0 %v231_v15 }
  0x23   :  { %234 = vmatpush3.bf16.msra.mxu0 %v231_v15 }
  0x24   :  { %236 = vmatprep.subr.bf16.mxu0 %v235_v18 }
  0x27   :  { %238 = vmatpush3.bf16.msra.mxu0 %v235_v18 }
  0x28   :  { %240 = vmatprep.subr.bf16.mxu0 %v239_v21 }
  0x2b   :  { %242 = vmatpush3.bf16.msra.mxu0 %v239_v21 }
  0x2c   :  { %244 = vmatprep.subr.bf16.mxu0 %v243_v24 }
  0x2f   :  { %246 = vmatpush3.bf16.msra.mxu0 %v243_v24 }
  0x30   :  { %248 = vmatprep.subr.bf16.mxu0 %v247_v27 }
  0x33   :  { %250 = vmatpush3.bf16.msra.mxu0 %v247_v27 }
  0x36   :  { %217 = vmatmul.mubr.f32.vlgmr.msra.gmra.mrb[0].mxu0 %v33_v28 }
  0x96   :  { %v137_v29 = vpop.permute.xlu0 %136 }
  0x9a   :  { %v142_v34 = vpop.permute.xlu0 %141 }
 0x109   :  { %v218_v31 = vpop.f32.mrb[0].mxu0 }
 0x10a   :  { %v129_v32 = vadd.f32 %v218_v31, %v165_v30  ;;  %v123_v33 = vpop.f32.mrb[1].mxu0 }
 0x10b   :  { %v124_v35 = vadd.f32 %v165_v30, %v123_v33 }
 0x10c   :  { %v145_v36 = vmul.f32 %v142_v34, %v129_v32 }
 0x10d   :  { %v144_v37 = vmul.f32 %v137_v29, %v124_v35 }
 0x10e   :  { %147 = vst [vmem:[#allocation5 + $0x8] sm:$0xff] %v145_v36 }
 0x10f   :  { %146 = vst [vmem:[#allocation5] sm:$0xff] %v144_v37 }
 0x110   :  { %290 = shalt.err (!%p287_p12)
}
 0x111   :  { %s291_s14 = scalar_lea.hbm %s384_s4, 256 }
 0x112   :  { %p292_p13 = scmp.ne.s32.totalorder %s384_s4, %s291_s14  ;;  %p295_p0 = scmp.lt.u32.totalorder %s291_s14, %s384_s4 }
 0x114   :  { %p297_p1 = pnand %p295_p0, %p292_p13 }
 0x116   :  { %300 = shalt.err (!%p297_p1)
}
 0x117   :  { %159 = dma.vmem_to_hbm [thread:$0]  %s154_s12, 256, %s384_s4, [#allocation4], %s306_s25, %s306_s25, %s307_s26  }
 0x118   :  { %303 = dma.done.wait [#allocation4], 256  }
 0x119   :  { %304 = vsyncadd [#allocation4], 4294967040 }
 0x11a   :  { %163 = vsyncpa [#allocation3], 1 }
 0x11b   :  { %164 = vsyncpa [#allocation4], 1 }

</bundles_post_ra>
